<compile_context>
chip_gen: v6e
topology: v6e:2x2x1
jax: 0.10.0
libtpu: 0.0.40
codegen_flags: <defaults>
</compile_context>

<pallas_src>
import math
from functools import partial

import jax
import jax.numpy as jnp
from jax.experimental import pallas as pl
from jax.experimental.pallas import tpu as pltpu


def _round_up(x, m):
    return (x + m - 1) // m * m


_VMEM_LIMIT = 32 * 1024 * 1024


# ---------------------------------------------------------------------------
# Pallas kernel 1: one output tile per grid point.
#   C[m_tile, n_tile] = A[m_tile, :] @ B[:, n_tile] + bias   (single full-K dot)
# Optional fused LeakyReLU epilogue; optional per-tile sum / sum-of-squares
# outputs (feeds the following BatchNorm without re-reading the activation).
# ---------------------------------------------------------------------------
def _conv_matmul_kernel(a_ref, b_ref, bias_ref, o_ref, *stat_refs,
                        negative_slope, tm, m_valid):
    y = jnp.dot(a_ref[...], b_ref[...], preferred_element_type=jnp.float32)
    y = y + bias_ref[...]                      # (tm, tn) + (1, tn) broadcast
    if negative_slope is not None:
        y = jnp.where(y >= 0, y, negative_slope * y)
    o_ref[...] = y
    if stat_refs:
        sum_ref, sq_ref = stat_refs
        rows = (pl.program_id(0) * tm
                + jax.lax.broadcasted_iota(jnp.int32, y.shape, 0))
        ym = jnp.where(rows < m_valid, y, 0.0)          # mask padded rows
        sum_ref[0, 0] = jnp.sum(ym, axis=0, keepdims=True)
        sq_ref[0, 0] = jnp.sum(ym * ym, axis=0, keepdims=True)


def conv3x3(x_nhwc, w, b, stride, *, fuse_leaky=None, emit_stats=False,
            tm=256, tn=256):
    """3x3 conv, padding=1.  w: (Cout, Cin, 3, 3) PyTorch layout.

    Returns (out_padded (M_pad, C_pad) f32, stats-or-None, Ho, Wo, tm_eff)."""
    N, H, W, Cin = x_nhwc.shape
    Cout = w.shape[0]

    xp = jnp.pad(x_nhwc, ((0, 0), (1, 1), (1, 1), (0, 0)))
    Ho = (H + 2 - 3) // stride + 1
    Wo = (W + 2 - 3) // stride + 1

    # im2col (glue): gather the 9 shifted (strided) views, channel-minor.
    cols = []
    for dy in range(3):
        for dx in range(3):
            cols.append(
                xp[:,
                   dy:dy + (Ho - 1) * stride + 1:stride,
                   dx:dx + (Wo - 1) * stride + 1:stride,
                   :])
    patches = jnp.concatenate(cols, axis=-1).reshape(N * Ho * Wo, 9 * Cin)
    w_mat = jnp.transpose(w, (2, 3, 1, 0)).reshape(9 * Cin, Cout)

    M, K = patches.shape
    K_pad = _round_up(K, 128)
    tn_eff = min(tn, _round_up(Cout, 128))
    C_pad = _round_up(Cout, tn_eff)
    tm_eff = min(tm, _round_up(M, 16))
    M_pad = _round_up(M, tm_eff)

    # bf16 MXU inputs, f32 accumulate.
    a = jnp.pad(patches, ((0, M_pad - M), (0, K_pad - K))).astype(jnp.bfloat16)
    bm = jnp.pad(w_mat, ((0, K_pad - K), (0, C_pad - Cout))).astype(jnp.bfloat16)
    bias = jnp.pad(b, (0, C_pad - Cout)).reshape(1, C_pad).astype(jnp.float32)

    n_m = M_pad // tm_eff
    n_n = C_pad // tn_eff

    out_shapes = [jax.ShapeDtypeStruct((M_pad, C_pad), jnp.float32)]
    out_specs = [pl.BlockSpec((tm_eff, tn_eff), lambda m, n: (m, n))]
    if emit_stats:
        stat_shape = jax.ShapeDtypeStruct((n_m, n_n, 1, tn_eff), jnp.float32)
        stat_spec = pl.BlockSpec((1, 1, 1, tn_eff), lambda m, n: (m, n, 0, 0))
        out_shapes += [stat_shape, stat_shape]
        out_specs += [stat_spec, stat_spec]

    res = pl.pallas_call(
        partial(_conv_matmul_kernel, negative_slope=fuse_leaky,
                tm=tm_eff, m_valid=M),
        out_shape=tuple(out_shapes),
        grid_spec=pltpu.PrefetchScalarGridSpec(
            num_scalar_prefetch=0,
            grid=(n_m, n_n),
            in_specs=[
                pl.BlockSpec((tm_eff, K_pad), lambda m, n: (m, 0)),
                pl.BlockSpec((K_pad, tn_eff), lambda m, n: (0, n)),
                pl.BlockSpec((1, tn_eff), lambda m, n: (0, n)),
            ],
            out_specs=out_specs,
        ),
        compiler_params=pltpu.CompilerParams(
            dimension_semantics=("parallel", "parallel"),
            vmem_limit_bytes=_VMEM_LIMIT),
    )(a, bm, bias)

    if emit_stats:
        out, sums, sumsqs = res
        return out, (sums, sumsqs), Ho, Wo, tm_eff
    return res[0], None, Ho, Wo, tm_eff


# ---------------------------------------------------------------------------
# Pallas kernel 2: BatchNorm apply (precomputed per-channel scale/shift)
# fused with LeakyReLU(0.2), tiled over rows.
# ---------------------------------------------------------------------------
def _bn_lrelu_kernel(x_ref, scale_ref, shift_ref, o_ref, *, slope):
    y = x_ref[...] * scale_ref[...] + shift_ref[...]
    o_ref[...] = jnp.where(y >= 0, y, slope * y)


def bn_leaky_apply(y_pad, sums, sumsqs, gamma, beta, m_valid, c_valid, tm,
                   eps=1e-5, slope=0.2):
    """Training-mode BatchNorm (biased batch variance) + LeakyReLU(0.2)."""
    M_pad, C_pad = y_pad.shape
    cnt = jnp.float32(m_valid)

    # Combine the per-tile partial sums emitted by the conv kernel (tiny).
    s = jnp.sum(sums, axis=0).reshape(C_pad)
    sq = jnp.sum(sumsqs, axis=0).reshape(C_pad)
    mean = s / cnt
    var = jnp.maximum(sq / cnt - mean * mean, 0.0)

    gamma_p = jnp.pad(gamma, (0, C_pad - c_valid))
    beta_p = jnp.pad(beta, (0, C_pad - c_valid))
    scale = gamma_p * jax.lax.rsqrt(var + eps)
    shift = beta_p - mean * scale
    scale = scale.reshape(1, C_pad).astype(jnp.float32)
    shift = shift.reshape(1, C_pad).astype(jnp.float32)

    return pl.pallas_call(
        partial(_bn_lrelu_kernel, slope=slope),
        out_shape=jax.ShapeDtypeStruct((M_pad, C_pad), jnp.float32),
        grid_spec=pltpu.PrefetchScalarGridSpec(
            num_scalar_prefetch=0,
            grid=(M_pad // tm,),
            in_specs=[
                pl.BlockSpec((tm, C_pad), lambda m: (m, 0)),
                pl.BlockSpec((1, C_pad), lambda m: (0, 0)),
                pl.BlockSpec((1, C_pad), lambda m: (0, 0)),
            ],
            out_specs=pl.BlockSpec((tm, C_pad), lambda m: (m, 0)),
        ),
        compiler_params=pltpu.CompilerParams(
            dimension_semantics=("parallel",),
            vmem_limit_bytes=_VMEM_LIMIT),
    )(y_pad, scale, shift)


# ---------------------------------------------------------------------------
# Parameter setup (glue): deterministic init + spectral normalization.
# ---------------------------------------------------------------------------
def spectral_normalize(w, key, n_iter=3, eps=1e-12):
    # mirrors torch spectral_norm: power iteration on W reshaped (Cout, -1)
    cout = w.shape[0]
    w_mat = w.reshape(cout, -1)
    u = jax.random.normal(key, (cout,), jnp.float32)
    u = u / (jnp.linalg.norm(u) + eps)
    v = None
    for _ in range(n_iter):
        v = w_mat.T @ u
        v = v / (jnp.linalg.norm(v) + eps)
        u = w_mat @ v
        u = u / (jnp.linalg.norm(u) + eps)
    sigma = u @ (w_mat @ v)
    return w / sigma


def init_discriminator_params(key, in_channels):
    cfg = []
    in_f = in_channels
    for i, out_f in enumerate([64, 128, 256, 512]):
        cfg.append(dict(cin=in_f, cout=out_f, stride=1, bn=(i != 0), act=True))
        cfg.append(dict(cin=out_f, cout=out_f, stride=2, bn=True, act=True))
        in_f = out_f
    cfg.append(dict(cin=in_f, cout=1, stride=1, bn=False, act=False))

    params = []
    for layer in cfg:
        key, kw, kb, ku = jax.random.split(key, 4)
        cin, cout = layer["cin"], layer["cout"]
        fan_in = cin * 9
        w = jax.random.normal(kw, (cout, cin, 3, 3), jnp.float32) / math.sqrt(fan_in)
        b = jax.random.normal(kb, (cout,), jnp.float32) * 0.05
        w = spectral_normalize(w, ku)
        p = dict(layer, w=w, b=b)
        if layer["bn"]:
            p["gamma"] = jnp.ones((cout,), jnp.float32)   # nn.BatchNorm2d default
            p["beta"] = jnp.zeros((cout,), jnp.float32)
        params.append(p)
    return params


# ---------------------------------------------------------------------------
# Forward pass.
# ---------------------------------------------------------------------------
def discriminator_forward(params, imgs_nchw):
    N = imgs_nchw.shape[0]
    x = jnp.transpose(imgs_nchw, (0, 2, 3, 1)).astype(jnp.float32)  # NCHW -> NHWC
    for p in params:
        # no-BN conv with activation (first block) fuses LeakyReLU in the
        # matmul epilogue; BN layers fuse the BN statistics instead.
        fuse = 0.2 if (p["act"] and not p["bn"]) else None
        y, stats, Ho, Wo, tm = conv3x3(
            x, p["w"], p["b"], p["stride"],
            fuse_leaky=fuse, emit_stats=p["bn"])
        M = N * Ho * Wo
        Cout = p["cout"]
        if p["bn"]:
            y = bn_leaky_apply(y, stats[0], stats[1], p["gamma"], p["beta"],
                               M, Cout, tm)
        x = y[:M, :Cout].reshape(N, Ho, Wo, Cout)
    return jnp.transpose(x, (0, 3, 1, 2))  # back to NCHW: (N, 1, ph, pw)


if __name__ == "__main__":
    key = jax.random.PRNGKey(0)
    kx, kp = jax.random.split(key)

    N, C, H, W = 2, 3, 16, 16
    imgs = jax.random.normal(kx, (N, C, H, W), jnp.float32)

    params = init_discriminator_params(kp, C)
    out = discriminator_forward(params, imgs)
    out = jax.block_until_ready(out)

    expected_shape = (N, 1, math.ceil(H / 2 ** 4), math.ceil(W / 2 ** 4))
    assert out.shape == expected_shape, (out.shape, expected_shape)
    assert jnp.all(jnp.isfinite(out))
    print("KERNEL_OK")
</pallas_src>

<mosaic_0001>
module attributes {stable_mosaic.version = 11 : i64} {
  func.func @_conv_matmul_kernel(%arg0: i32, %arg1: i32, %arg2: memref<256x128xbf16, #tpu.memory_space<vmem>>, %arg3: memref<128x128xbf16, #tpu.memory_space<vmem>>, %arg4: memref<1x128xf32, #tpu.memory_space<vmem>>, %arg5: memref<256x128xf32, #tpu.memory_space<vmem>>) attributes {dimension_semantics = [#tpu.dimension_semantics<parallel>, #tpu.dimension_semantics<parallel>], iteration_bounds = array<i64: 2, 1>, scalar_prefetch = 0 : i64, scratch_operands = 0 : i64, tpu.core_type = #tpu.core_type<tc>, window_params = [{transform_indices = @transform_0, window_bounds = array<i64: 256, 128>}, {transform_indices = @transform_1, window_bounds = array<i64: 128, 128>}, {transform_indices = @transform_2, window_bounds = array<i64: 1, 128>}, {transform_indices = @transform_3, window_bounds = array<i64: 256, 128>}]} {
    %c0 = arith.constant 0 : index
    %c0_0 = arith.constant 0 : index
    %0 = vector.load %arg2[%c0, %c0_0] : memref<256x128xbf16, #tpu.memory_space<vmem>>, vector<256x128xbf16>
    %c0_1 = arith.constant 0 : index
    %c0_2 = arith.constant 0 : index
    %1 = vector.load %arg3[%c0_1, %c0_2] : memref<128x128xbf16, #tpu.memory_space<vmem>>, vector<128x128xbf16>
    %cst = arith.constant dense<0.000000e+00> : vector<256x128xf32>
    %2 = tpu.matmul %0, %1, %cst {dimension_numbers = #tpu.dot_dimension_numbers<[1], [0], [0], [1], [0, 0, 1, 1], [], []>} : vector<256x128xbf16>, vector<128x128xbf16>, vector<256x128xf32> -> vector<256x128xf32>
    %c0_3 = arith.constant 0 : index
    %c0_4 = arith.constant 0 : index
    %3 = vector.load %arg4[%c0_3, %c0_4] : memref<1x128xf32, #tpu.memory_space<vmem>>, vector<1x128xf32>
    %4 = vector.broadcast %3 : vector<1x128xf32> to vector<256x128xf32>
    %5 = arith.addf %2, %4 : vector<256x128xf32>
    %cst_5 = arith.constant 0.000000e+00 : f32
    %6 = vector.broadcast %cst_5 : f32 to vector<256x128xf32>
    %7 = arith.cmpf oge, %5, %6 : vector<256x128xf32>
    %cst_6 = arith.constant 2.000000e-01 : f32
    %8 = vector.broadcast %cst_6 : f32 to vector<256x128xf32>
    %9 = arith.mulf %8, %5 : vector<256x128xf32>
    %10 = arith.select %7, %5, %9 : vector<256x128xi1>, vector<256x128xf32>
    %c0_7 = arith.constant 0 : index
    %c0_8 = arith.constant 0 : index
    %11 = vector.load %arg5[%c0_7, %c0_8] : memref<256x128xf32, #tpu.memory_space<vmem>>, vector<256x128xf32>
    tpu.vector_store %arg5[%c0_7, %c0_8], %10 {strides = array<i32>} : memref<256x128xf32, #tpu.memory_space<vmem>>, vector<256x128xf32>,
    return
  }
  func.func @transform_0(%arg0: i32, %arg1: i32) -> (i32, i32) {
    %c0_i32 = arith.constant 0 : i32
    %c0_i32_0 = arith.constant 0 : i32
    return %arg0, %c0_i32 : i32, i32
  }
  func.func @transform_1(%arg0: i32, %arg1: i32) -> (i32, i32) {
    %c0_i32 = arith.constant 0 : i32
    %c0_i32_0 = arith.constant 0 : i32
    return %c0_i32, %arg1 : i32, i32
  }
  func.func @transform_2(%arg0: i32, %arg1: i32) -> (i32, i32) {
    %c0_i32 = arith.constant 0 : i32
    %c0_i32_0 = arith.constant 0 : i32
    return %c0_i32, %arg1 : i32, i32
  }
  func.func @transform_3(%arg0: i32, %arg1: i32) -> (i32, i32) {
    %c0_i32 = arith.constant 0 : i32
    return %arg0, %arg1 : i32, i32
  }
}

</mosaic_0001>

<bundles_post_ra>
// kernel: tpu_custom_call.1
= control target key start
LH: loop header
LB: loop body
LE: loop exit
PB: predicated region body
PF: predicated region fallthrough
CT: control target
= control target key end

     0   :  { %8 = vsyncpa [#allocation3], 0  ;;  %s1531_s0 = inlined_call_operand.hbm [shape: bf16[512,128], index: 0, kind: input, shape index: {}]   ;;  %s1532_s1 = inlined_call_operand.hbm [shape: bf16[128,128], index: 1, kind: input, shape index: {}]   ;;  %s1533_s2 = inlined_call_operand.vmem [shape: f32[1,128], index: 2, kind: input, shape index: {}]   ;;  %s1534_s3 = inlined_call_operand.hbm [shape: f32[512,128], index: 3, kind: output, shape index: {}]  }
   0x1   :  { %10 = vsyncpa [#allocation3 + $0x1], 0 }
   0x2   :  { %11 = vsyncpa [#allocation6], 0 }
   0x3   :  { %12 = vsyncpa [#allocation4], 0 }
   0x4   :  { %14 = vsyncpa [#allocation4 + $0x1], 0  ;;  %s1253_s12 = smov 0   ;;  %s1255_s13 = smov 0  }
   0x5   :  { %s1257_s14 = smov 0   ;;  %s1259_s15 = smov 0  }
   0x6   :  { %s1261_s16 = smov 0   ;;  %s1263_s17 = smov 0  }
   0x7 LB: > { %s852_s18 = sadd.s32 4294967295, %s1224_s17   ;;  %s853_s19 = sadd.s32 4294967294, %s1224_s17   ;;  %s1224_s17 = sphi %s1263_s17, %s20_s17   ;;  %s1220_s16 = sphi %s1261_s16, %s1556_s16   ;;  %s1216_s15 = sphi %s1259_s15, %s1555_s15   ;;  %s1212_s14 = sphi %s1257_s14, %s1554_s14   ;;  %s1208_s13 = sphi %s1255_s13, %s1553_s13   ;;  %s1204_s12 = sphi %s1253_s12, %s1552_s12  }
   0x8   : > { %p52_p0 = scmp.ne.s32.totalorder %s1208_s13, %s1204_s12  ;;  %p1287_p1 = scmp.eq.s32.totalorder %s852_s18, 0 }
   0x9   : > { %p1291_p2 = scmp.eq.s32.totalorder %s852_s18, 1  ;;  %p136_p3 = scmp.eq.s32.totalorder %s853_s19, 1 }
   0xa   : > { %p1297_p4 = por %p1287_p1, %p52_p0  ;;  %p854_p5 = scmp.ge.s32.totalorder %s1224_s17, 1 }
   0xb   : > { %p1302_p6 = por %p136_p3, %p52_p0  ;;  %p143_p7 = scmp.lt.s32.totalorder %s1224_s17, 3 }
   0xc   : > { %s1540_s22 = scalar_select %p1297_p4, 1, 0 }
   0xd   : > { %s1541_s23 = scalar_select %p1302_p6, 1, 0 }
   0xe   : > { %p1307_p8 = pnand %p854_p5, %p143_p7  ;;  %s1226_s25 = smov [#allocation5]  }
   0xf   : > { %s157_s26 = sshll.u32 %s1226_s25, 4  ;;  %s32_s28 = sadd.s32 1, %s1220_s16  ;;  %s158_s26 = int_to_ptr.vmem [resolvable:$true] %s157_s26 }
  0x10   : > { %p993_p9 = pneg %p1307_p8  ;;  %s1097_s29 = scalar_lea.vmem %s158_s26, 1024 }
  0x11   : > { %p1098_p13 = scmp.ne.s32.totalorder %s158_s26, %s1097_s29  ;;  %p1105_p5 = scmp.lt.s32.totalorder %s158_s26, %s158_s26 }
  0x12   : > { %p1316_p11 = pnand %p993_p9, %p1287_p1  ;;  %p1106_p7 = scmp.lt.s32.totalorder %s1097_s29, %s1097_s29 }
  0x14   : > { %p1088_p12 = pneg %p1316_p11  ;;  %p1107_p6 = por %p1106_p7, %p1105_p5 }
  0x16   : > { %p1100_p0 = pnand %p1098_p13, %p1088_p12 }
  0x18   : > { %p1101_p3 = pneg %p1100_p0 }
  0x1a   : > { %p1108_p4 = pnand %p1107_p6, %p1101_p3 }
  0x1c   : > { %1111 = shalt.err (!%p1108_p4)
}
  0x1d   : > { %s1536_s30 = smov 64   ;;  %s1537_s4 = smov 4  }
  0x1e   : > { %996 = dma.hbm_to_vmem [thread:$0]  (!%p1316_p11), %s1532_s1, 1024, %s158_s26, [#allocation6], %s1536_s30, %s1536_s30, %s1537_s4  }
  0x1f   : > { %p34_p4 = scmp.ge.s32.totalorder %s32_s28, 2  ;;  %s39_s7 = sadd.s32 1, %s1212_s14 }
  0x20   : > { %p46_p6 = scmp.ne.s32.totalorder %s1212_s14, %s1208_s13  ;;  %p47_p9 = scmp.eq.s32.totalorder %s1224_s17, 0 }
  0x21   : > { %s1558_s28 = smov (%p34_p4, %s32_s28), 0  ;;  %p1006_p0 = scmp.lt.s32.totalorder %s1224_s17, 2 }
  0x22   : > { %p1337_p12 = por %p47_p9, %p46_p6  ;;  %p1343_p13 = por %p1291_p2, %p46_p6 }
  0x23   : > { %s36_s10 = ssub.s32 %s1220_s16, %s1558_s28  ;;  %s177_s11 = sand.u32 1, %s1212_s14  }
  0x24   : > { %p37_p11 = scmp.eq.s32.totalorder %s36_s10, 0  ;;  %s858_s18 = sshll.u32 %s177_s11, 7 }
  0x25   : > { %s895_s25 = sshll.u32 %s1220_s16, 11  ;;  %s181_s5 = scalar_lea.vmem [#allocation2], %s858_s18 }
  0x26   : > { %s1352_s19 = scalar_select %p37_p11, %s1212_s14, %s39_s7  }
  0x27   : > { %s187_s29 = scalar_lea.hbm %s1531_s0, %s895_s25  ;;  %s188_s6 = sshll.u32 %s181_s5, 4  ;;  %s189_s6 = int_to_ptr.vmem [resolvable:$true] %s188_s6 }
  0x28   : > { %p1360_p2 = pnand %p1006_p0, %p1337_p12  ;;  %s178_s30 = scalar_lea.sflag [#allocation3], %s177_s11 }
  0x29   : > { %s1125_s10 = scalar_lea.vmem %s189_s6, 2048  ;;  %s1229_s7 = smov [#allocation2]  }
  0x2a   : > { %p1114_p3 = pneg %p1360_p2  ;;  %p1126_p5 = scmp.ne.s32.totalorder %s189_s6, %s1125_s10 }
  0x2b   : > { %s1130_s4 = sshll.u32 %s1229_s7, 4  ;;  %s1131_s4 = int_to_ptr.vmem [resolvable:$false] %s1130_s4 }
  0x2c   : > { %p1128_p7 = pnand %p1126_p5, %p1114_p3  ;;  %s1132_s25 = scalar_lea.vmem %s1131_s4, 4096 }
  0x2d   : > { %p1133_p6 = scmp.lt.s32.totalorder %s189_s6, %s1131_s4  ;;  %p1134_p9 = scmp.lt.s32.totalorder %s1132_s25, %s1125_s10 }
  0x2e   : > { %p1129_p4 = pneg %p1128_p7 }
  0x2f   : > { %p1135_p11 = por %p1134_p9, %p1133_p6 }
  0x31   : > { %p1136_p10 = pnand %p1135_p11, %p1129_p4 }
  0x33   : > { %1139 = shalt.err (!%p1136_p10)
}
  0x34   : > { %s1547_s8 = smov 4   ;;  %s1548_s18 = smov 64  }
  0x35   : > { %1000 = dma.hbm_to_vmem [thread:$0]  (!%p1360_p2), %s187_s29, 2048, %s189_s6, %s178_s30, %s1548_s18, %s1548_s18, %s1547_s8  }
  0x36   : > { %200 = sbr.rel (%p1307_p8) target bundleno = 338 (0x152), region = 32  ;;  %s1374_s11 = sand.u32 (!%p1307_p8), 1, %s1208_s13  }
  0x37   : > { %s862_s4 = sshll.u32 (!%p1307_p8), %s1374_s11, 7  ;;  %s203_s26 = scalar_lea.sflag (!%p1307_p8), [#allocation3], %s1374_s11 }
  0x38   : > { %s1378_s27 = scalar_lea.vmem (!%p1307_p8), [#allocation2], %s862_s4  ;;  %p1549_p10 = scmp.ne.s32.totalorder (!%p1307_p8), %s1540_s22, 0 }
  0x3b   : > { %1191 = dma.done.wait (%p1549_p10), %s203_s26, 2048  }
  0x3c   : > { %1193 = vsyncadd (%p1549_p10), %s203_s26, 4294965248 }
  0x3d   : > { %1195 = dma.done.wait (%p1287_p1), [#allocation6], 1024  }
  0x3e   : > { %1197 = vsyncadd (%p1287_p1), [#allocation6], 4294966272  ;;  %v1062_v0 = vld [vmem:[#allocation5 + $0x38] sm:$0xff]   ;;  %v1063_v1 = vld [vmem:[#allocation5 + $0x30] sm:$0xff]   ;;  %s864_s24 = sshll.u32 %s1374_s11, 8  ;;  %s896_s29 = sshll.u32 %s1216_s15, 12 }
  0x3f   : > { %921 = vmatprep.subr.bf16.mxu0 %v1062_v0  ;;  %969 = vmatprep.subr.bf16.mxu1 %v1062_v0  ;;  %v1064_v2 = vld [vmem:[#allocation5 + $0x28] sm:$0xff]   ;;  %v1065_v3 = vld [vmem:[#allocation5 + $0x20] sm:$0xff]   ;;  %v1066_v6 = vld [vmem:[#allocation5 + $0x18] sm:$0xff]   ;;  %s1416_s30 = scalar_lea.vmem [#allocation7], %s864_s24  ;;  %s1479_s21 = scalar_lea.hbm %s1534_s3, %s896_s29 }
  0x40   : > { %922 = vmatpush3.bf16.msra.mxu0 %v1062_v0  ;;  %977 = vmatpush3.bf16.msra.mxu1 %v1062_v0  ;;  %v1070_v4 = vld [vmem:[%s1378_s27] sm:$0xff]   ;;  %v1067_v7 = vld [vmem:[#allocation5 + $0x10] sm:$0xff]   ;;  %v1068_v8 = vld [vmem:[#allocation5 + $0x8] sm:$0xff]   ;;  %s745_s5 = sshll.u32 %s1416_s30, 4  ;;  %s731_s10 = scalar_lea.sflag [#allocation4], %s1374_s11  ;;  %s1481_s5 = int_to_ptr.vmem [resolvable:$true] %s745_s5 }
  0x41   : > { %923 = vmatprep.subr.bf16.mxu0 %v1063_v1  ;;  %970 = vmatprep.subr.bf16.mxu1 %v1063_v1  ;;  %v1071_v5 = vld [vmem:[%s1378_s27 + $0x40] sm:$0xff]   ;;  %v1072_v10 = vld [vmem:[%s1378_s27 + $0x8] sm:$0xff]   ;;  %v1074_v12 = vld [vmem:[%s1378_s27 + $0x10] sm:$0xff]   ;;  %s1140_s7 = scalar_lea.vmem %s1481_s5, 4096  ;;  %s1230_s25 = smov [#allocation7]  }
  0x42   : > { %937 = vmatprep.mubr.bf16.mxu0 %v1070_v4  ;;  %953 = vmatprep.mubr.bf16.mxu1 %v1071_v5  ;;  %v1069_v9 = vld [vmem:[#allocation5] sm:$0xff]   ;;  %v1073_v11 = vld [vmem:[%s1378_s27 + $0x48] sm:$0xff]   ;;  %v1075_v13 = vld [vmem:[%s1378_s27 + $0x50] sm:$0xff]   ;;  %p1141_p1 = scmp.ne.s32.totalorder %s1481_s5, %s1140_s7  ;;  %s1144_s8 = sshll.u32 %s1230_s25, 4  ;;  %s1145_s8 = int_to_ptr.vmem [resolvable:$false] %s1144_s8 }
  0x43   : > { %v1076_v14 = vld [vmem:[%s1378_s27 + $0x18] sm:$0xff]   ;;  %v1078_v16 = vld [vmem:[%s1378_s27 + $0x20] sm:$0xff]   ;;  %v1080_v18 = vld [vmem:[%s1378_s27 + $0x28] sm:$0xff]   ;;  %s1146_s18 = scalar_lea.vmem %s1145_s8, 8192  ;;  %p1147_p0 = scmp.lt.s32.totalorder %s1481_s5, %s1145_s8 }
  0x44   : > { %924 = vmatpush3.bf16.msra.mxu0 %v1063_v1  ;;  %978 = vmatpush3.bf16.msra.mxu1 %v1063_v1  ;;  %v1077_v15 = vld [vmem:[%s1378_s27 + $0x58] sm:$0xff]   ;;  %v1079_v17 = vld [vmem:[%s1378_s27 + $0x60] sm:$0xff]   ;;  %v1081_v19 = vld [vmem:[%s1378_s27 + $0x68] sm:$0xff]   ;;  %p1142_p8 = pnand %p1141_p1, %p1343_p13  ;;  %p1148_p2 = scmp.lt.s32.totalorder %s1146_s18, %s1140_s7 }
  0x45   : > { %925 = vmatprep.subr.bf16.mxu0 %v1064_v2  ;;  %971 = vmatprep.subr.bf16.mxu1 %v1064_v2  ;;  %v1082_v20 = vld [vmem:[%s1378_s27 + $0x30] sm:$0xff]   ;;  %v1084_v22 = vld [vmem:[%s1378_s27 + $0x38] sm:$0xff]   ;;  %v1407_v24 = vld [vmem:[%s1533_s2] ss:$0 sm:$0xff] }
  0x46   : > { %v1083_v21 = vld [vmem:[%s1378_s27 + $0x70] sm:$0xff]   ;;  %v1085_v23 = vld [vmem:[%s1378_s27 + $0x78] sm:$0xff]   ;;  %p1143_p12 = pneg %p1142_p8  ;;  %p1149_p3 = por %p1148_p2, %p1147_p0 }
  0x48   : > { %926 = vmatpush3.bf16.msra.mxu0 %v1064_v2  ;;  %979 = vmatpush3.bf16.msra.mxu1 %v1064_v2  ;;  %p1150_p5 = pnand %p1149_p3, %p1143_p12 }
  0x49   : > { %927 = vmatprep.subr.bf16.mxu0 %v1065_v3  ;;  %972 = vmatprep.subr.bf16.mxu1 %v1065_v3 }
  0x4c   : > { %928 = vmatpush3.bf16.msra.mxu0 %v1065_v3  ;;  %980 = vmatpush3.bf16.msra.mxu1 %v1065_v3 }
  0x4d   : > { %929 = vmatprep.subr.bf16.mxu0 %v1066_v6  ;;  %973 = vmatprep.subr.bf16.mxu1 %v1066_v6 }
  0x50   : > { %930 = vmatpush3.bf16.msra.mxu0 %v1066_v6  ;;  %981 = vmatpush3.bf16.msra.mxu1 %v1066_v6 }
  0x51   : > { %931 = vmatprep.subr.bf16.mxu0 %v1067_v7  ;;  %974 = vmatprep.subr.bf16.mxu1 %v1067_v7 }
  0x54   : > { %932 = vmatpush3.bf16.msra.mxu0 %v1067_v7  ;;  %982 = vmatpush3.bf16.msra.mxu1 %v1067_v7 }
  0x55   : > { %933 = vmatprep.subr.bf16.mxu0 %v1068_v8  ;;  %975 = vmatprep.subr.bf16.mxu1 %v1068_v8 }
  0x58   : > { %934 = vmatpush3.bf16.msra.mxu0 %v1068_v8  ;;  %983 = vmatpush3.bf16.msra.mxu1 %v1068_v8 }
  0x59   : > { %935 = vmatprep.subr.bf16.mxu0 %v1069_v9  ;;  %976 = vmatprep.subr.bf16.mxu1 %v1069_v9 }
  0x5c   : > { %936 = vmatpush3.bf16.msra.mxu0 %v1069_v9  ;;  %984 = vmatpush3.bf16.msra.mxu1 %v1069_v9 }
  0x5f   : > { %938 = vmatmul.mubr.bf16.vlgmr.msra.gmra.mxu0 %v1072_v10  ;;  %954 = vmatmul.mubr.bf16.vlgmr.msra.gmra.mxu1 %v1073_v11 }
  0x60   : > { %941 = vmatprep.mubr.bf16.mxu0 %v1074_v12  ;;  %957 = vmatprep.mubr.bf16.mxu1 %v1075_v13 }
  0x67   : > { %942 = vmatmul.mubr.bf16.gmra.mxu0 %v1076_v14  ;;  %958 = vmatmul.mubr.bf16.gmra.mxu1 %v1077_v15 }
  0x68   : > { %945 = vmatprep.mubr.bf16.mxu0 %v1078_v16  ;;  %961 = vmatprep.mubr.bf16.mxu1 %v1079_v17 }
  0x6f   : > { %946 = vmatmul.mubr.bf16.gmra.mxu0 %v1080_v18  ;;  %962 = vmatmul.mubr.bf16.gmra.mxu1 %v1081_v19 }
  0x70   : > { %949 = vmatprep.mubr.bf16.mxu0 %v1082_v20  ;;  %965 = vmatprep.mubr.bf16.mxu1 %v1083_v21 }
  0x77   : > { %950 = vmatmul.mubr.bf16.gmra.mxu0 %v1084_v22  ;;  %966 = vmatmul.mubr.bf16.gmra.mxu1 %v1085_v23 }
 0x11f   : > { %v939_v25 = vpop.f32.mrf.mxu0  ;;  %v955_v26 = vpop.f32.mrf.mxu1 }
 0x120   : > { %v484_v27 = vadd.f32 %v939_v25, %v1407_v24  ;;  %v548_v28 = vadd.f32 %v955_v26, %v1407_v24 }
 0x121   : > { %v475_v29 = vpop.f32.mrf.mxu0  ;;  %v539_v30 = vpop.f32.mrf.mxu1 }
 0x122   : > { %vm604_vm0 = vcmp.ge.f32.partialorder %v484_v27, 0.0  ;;  %v636_v31 = vmul.f32 0.2, %v484_v27  ;;  %vm620_vm1 = vcmp.ge.f32.partialorder %v548_v28, 0.0  ;;  %v652_v32 = vmul.f32 0.2, %v548_v28 }
 0x123   : > { %v476_v33 = vadd.f32 %v1407_v24, %v475_v29  ;;  %v540_v34 = vadd.f32 %v1407_v24, %v539_v30  ;;  %v940_v35 = vpop.f32.mrf.mxu0  ;;  %v956_v36 = vpop.f32.mrf.mxu1 }
 0x124   : > { %v668_v37 = vsel %vm604_vm0, %v484_v27, %v636_v31  ;;  %v684_v38 = vsel %vm620_vm1, %v548_v28, %v652_v32  ;;  %v487_v39 = vadd.f32 %v940_v35, %v1407_v24  ;;  %v551_v40 = vadd.f32 %v956_v36, %v1407_v24 }
 0x125   : > { %700 = vst [vmem:[%s1416_s30 + $0x10] sm:$0xff] %v668_v37  ;;  %716 = vst [vmem:[%s1416_s30 + $0x90] sm:$0xff] %v684_v38  ;;  %vm602_vm2 = vcmp.ge.f32.partialorder %v476_v33, 0.0  ;;  %v634_v41 = vmul.f32 0.2, %v476_v33  ;;  %vm618_vm3 = vcmp.ge.f32.partialorder %v540_v34, 0.0  ;;  %v478_v43 = vpop.f32.mrf.mxu0  ;;  %v542_v44 = vpop.f32.mrf.mxu1 }
 0x126   : > { %v650_v42 = vmul.f32 0.2, %v540_v34  ;;  %vm605_vm4 = vcmp.ge.f32.partialorder %v487_v39, 0.0  ;;  %v637_v45 = vmul.f32 0.2, %v487_v39  ;;  %vm621_vm5 = vcmp.ge.f32.partialorder %v551_v40, 0.0 }
 0x127   : > { %v653_v46 = vmul.f32 0.2, %v551_v40  ;;  %v666_v47 = vsel %vm602_vm2, %v476_v33, %v634_v41  ;;  %v479_v49 = vadd.f32 %v1407_v24, %v478_v43  ;;  %v543_v50 = vadd.f32 %v1407_v24, %v542_v44  ;;  %v943_v51 = vpop.f32.mrf.mxu0  ;;  %v959_v52 = vpop.f32.mrf.mxu1 }
 0x128   : > { %v682_v48 = vsel %vm618_vm3, %v540_v34, %v650_v42  ;;  %698 = vst [vmem:[%s1416_s30] sm:$0xff] %v666_v47  ;;  %v669_v53 = vsel %vm605_vm4, %v487_v39, %v637_v45  ;;  %v500_v55 = vadd.f32 %v943_v51, %v1407_v24  ;;  %v564_v56 = vadd.f32 %v959_v52, %v1407_v24 }
 0x129   : > { %714 = vst [vmem:[%s1416_s30 + $0x80] sm:$0xff] %v682_v48  ;;  %v685_v54 = vsel %vm621_vm5, %v551_v40, %v653_v46  ;;  %701 = vst [vmem:[%s1416_s30 + $0x18] sm:$0xff] %v669_v53  ;;  %vm603_vm6 = vcmp.ge.f32.partialorder %v479_v49, 0.0  ;;  %v635_v57 = vmul.f32 0.2, %v479_v49  ;;  %vm619_vm7 = vcmp.ge.f32.partialorder %v543_v50, 0.0  ;;  %v491_v59 = vpop.f32.mrf.mxu0  ;;  %v555_v60 = vpop.f32.mrf.mxu1 }
 0x12a   : > { %717 = vst [vmem:[%s1416_s30 + $0x98] sm:$0xff] %v685_v54  ;;  %v651_v58 = vmul.f32 0.2, %v543_v50  ;;  %vm608_vm8 = vcmp.ge.f32.partialorder %v500_v55, 0.0  ;;  %v640_v61 = vmul.f32 0.2, %v500_v55  ;;  %v492_v1 = vadd.f32 %v1407_v24, %v491_v59 }
 0x12b   : > { %vm624_vm9 = vcmp.ge.f32.partialorder %v564_v56, 0.0  ;;  %v656_v62 = vmul.f32 0.2, %v564_v56  ;;  %v667_v63 = vsel %vm603_vm6, %v479_v49, %v635_v57  ;;  %v556_v2 = vadd.f32 %v1407_v24, %v555_v60  ;;  %v944_v3 = vpop.f32.mrf.mxu0  ;;  %v960_v4 = vpop.f32.mrf.mxu1 }
 0x12c   : > { %v683_v0 = vsel %vm619_vm7, %v543_v50, %v651_v58  ;;  %699 = vst [vmem:[%s1416_s30 + $0x8] sm:$0xff] %v667_v63  ;;  %v672_v5 = vsel %vm608_vm8, %v500_v55, %v640_v61  ;;  %v503_v7 = vadd.f32 %v944_v3, %v1407_v24  ;;  %v567_v8 = vadd.f32 %v960_v4, %v1407_v24 }
 0x12d   : > { %715 = vst [vmem:[%s1416_s30 + $0x88] sm:$0xff] %v683_v0  ;;  %v688_v6 = vsel %vm624_vm9, %v564_v56, %v656_v62  ;;  %704 = vst [vmem:[%s1416_s30 + $0x30] sm:$0xff] %v672_v5  ;;  %vm606_vm10 = vcmp.ge.f32.partialorder %v492_v1, 0.0  ;;  %v638_v9 = vmul.f32 0.2, %v492_v1  ;;  %vm622_vm11 = vcmp.ge.f32.partialorder %v556_v2, 0.0  ;;  %v494_v11 = vpop.f32.mrf.mxu0  ;;  %v558_v12 = vpop.f32.mrf.mxu1 }
 0x12e   : > { %720 = vst [vmem:[%s1416_s30 + $0xb0] sm:$0xff] %v688_v6  ;;  %v654_v10 = vmul.f32 0.2, %v556_v2  ;;  %vm609_vm12 = vcmp.ge.f32.partialorder %v503_v7, 0.0  ;;  %v641_v13 = vmul.f32 0.2, %v503_v7  ;;  %v495_v17 = vadd.f32 %v1407_v24, %v494_v11 }
 0x12f   : > { %vm625_vm13 = vcmp.ge.f32.partialorder %v567_v8, 0.0  ;;  %v657_v14 = vmul.f32 0.2, %v567_v8  ;;  %v670_v15 = vsel %vm606_vm10, %v492_v1, %v638_v9  ;;  %v559_v18 = vadd.f32 %v1407_v24, %v558_v12  ;;  %v947_v19 = vpop.f32.mrf.mxu0  ;;  %v963_v20 = vpop.f32.mrf.mxu1 }
 0x130   : > { %v686_v16 = vsel %vm622_vm11, %v556_v2, %v654_v10  ;;  %702 = vst [vmem:[%s1416_s30 + $0x20] sm:$0xff] %v670_v15  ;;  %v673_v21 = vsel %vm609_vm12, %v503_v7, %v641_v13  ;;  %v516_v23 = vadd.f32 %v947_v19, %v1407_v24  ;;  %v580_v25 = vadd.f32 %v963_v20, %v1407_v24 }
 0x131   : > { %718 = vst [vmem:[%s1416_s30 + $0xa0] sm:$0xff] %v686_v16  ;;  %v689_v22 = vsel %vm625_vm13, %v567_v8, %v657_v14  ;;  %705 = vst [vmem:[%s1416_s30 + $0x38] sm:$0xff] %v673_v21  ;;  %vm607_vm14 = vcmp.ge.f32.partialorder %v495_v17, 0.0  ;;  %v639_v26 = vmul.f32 0.2, %v495_v17  ;;  %vm623_vm15 = vcmp.ge.f32.partialorder %v559_v18, 0.0  ;;  %v507_v28 = vpop.f32.mrf.mxu0  ;;  %v571_v29 = vpop.f32.mrf.mxu1 }
 0x132   : > { %721 = vst [vmem:[%s1416_s30 + $0xb8] sm:$0xff] %v689_v22  ;;  %v655_v27 = vmul.f32 0.2, %v559_v18  ;;  %vm612_vm0 = vcmp.ge.f32.partialorder %v516_v23, 0.0  ;;  %v644_v30 = vmul.f32 0.2, %v516_v23  ;;  %v508_v34 = vadd.f32 %v1407_v24, %v507_v28 }
 0x133   : > { %vm628_vm1 = vcmp.ge.f32.partialorder %v580_v25, 0.0  ;;  %v660_v31 = vmul.f32 0.2, %v580_v25  ;;  %v671_v32 = vsel %vm607_vm14, %v495_v17, %v639_v26  ;;  %v572_v35 = vadd.f32 %v1407_v24, %v571_v29  ;;  %v948_v36 = vpop.f32.mrf.mxu0  ;;  %v964_v37 = vpop.f32.mrf.mxu1 }
 0x134   : > { %v687_v33 = vsel %vm623_vm15, %v559_v18, %v655_v27  ;;  %703 = vst [vmem:[%s1416_s30 + $0x28] sm:$0xff] %v671_v32  ;;  %v676_v38 = vsel %vm612_vm0, %v516_v23, %v644_v30  ;;  %v519_v40 = vadd.f32 %v948_v36, %v1407_v24  ;;  %v583_v41 = vadd.f32 %v964_v37, %v1407_v24 }
 0x135   : > { %719 = vst [vmem:[%s1416_s30 + $0xa8] sm:$0xff] %v687_v33  ;;  %v692_v39 = vsel %vm628_vm1, %v580_v25, %v660_v31  ;;  %708 = vst [vmem:[%s1416_s30 + $0x50] sm:$0xff] %v676_v38  ;;  %vm610_vm2 = vcmp.ge.f32.partialorder %v508_v34, 0.0  ;;  %v642_v42 = vmul.f32 0.2, %v508_v34  ;;  %vm626_vm3 = vcmp.ge.f32.partialorder %v572_v35, 0.0  ;;  %v510_v44 = vpop.f32.mrf.mxu0  ;;  %v574_v45 = vpop.f32.mrf.mxu1 }
 0x136   : > { %724 = vst [vmem:[%s1416_s30 + $0xd0] sm:$0xff] %v692_v39  ;;  %v658_v43 = vmul.f32 0.2, %v572_v35  ;;  %vm613_vm4 = vcmp.ge.f32.partialorder %v519_v40, 0.0  ;;  %v645_v46 = vmul.f32 0.2, %v519_v40  ;;  %v511_v50 = vadd.f32 %v1407_v24, %v510_v44 }
 0x137   : > { %vm629_vm5 = vcmp.ge.f32.partialorder %v583_v41, 0.0  ;;  %v661_v47 = vmul.f32 0.2, %v583_v41  ;;  %v674_v48 = vsel %vm610_vm2, %v508_v34, %v642_v42  ;;  %v575_v51 = vadd.f32 %v1407_v24, %v574_v45  ;;  %v951_v52 = vpop.f32.mrf.mxu0  ;;  %v967_v53 = vpop.f32.mrf.mxu1 }
 0x138   : > { %v690_v49 = vsel %vm626_vm3, %v572_v35, %v658_v43  ;;  %706 = vst [vmem:[%s1416_s30 + $0x40] sm:$0xff] %v674_v48  ;;  %v677_v54 = vsel %vm613_vm4, %v519_v40, %v645_v46  ;;  %v532_v56 = vadd.f32 %v951_v52, %v1407_v24  ;;  %v596_v57 = vadd.f32 %v967_v53, %v1407_v24 }
 0x139   : > { %722 = vst [vmem:[%s1416_s30 + $0xc0] sm:$0xff] %v690_v49  ;;  %v693_v55 = vsel %vm629_vm5, %v583_v41, %v661_v47  ;;  %709 = vst [vmem:[%s1416_s30 + $0x58] sm:$0xff] %v677_v54  ;;  %vm611_vm6 = vcmp.ge.f32.partialorder %v511_v50, 0.0  ;;  %v643_v58 = vmul.f32 0.2, %v511_v50  ;;  %vm627_vm7 = vcmp.ge.f32.partialorder %v575_v51, 0.0  ;;  %v523_v60 = vpop.f32.mrf.mxu0  ;;  %v587_v61 = vpop.f32.mrf.mxu1 }
 0x13a   : > { %725 = vst [vmem:[%s1416_s30 + $0xd8] sm:$0xff] %v693_v55  ;;  %v659_v59 = vmul.f32 0.2, %v575_v51  ;;  %vm616_vm8 = vcmp.ge.f32.partialorder %v532_v56, 0.0  ;;  %v648_v62 = vmul.f32 0.2, %v532_v56  ;;  %v524_v2 = vadd.f32 %v1407_v24, %v523_v60 }
 0x13b   : > { %vm632_vm9 = vcmp.ge.f32.partialorder %v596_v57, 0.0  ;;  %v664_v63 = vmul.f32 0.2, %v596_v57  ;;  %v675_v0 = vsel %vm611_vm6, %v511_v50, %v643_v58  ;;  %v588_v3 = vadd.f32 %v1407_v24, %v587_v61  ;;  %v952_v4 = vpop.f32.mrf.mxu0  ;;  %v968_v5 = vpop.f32.mrf.mxu1 }
 0x13c   : > { %v691_v1 = vsel %vm627_vm7, %v575_v51, %v659_v59  ;;  %707 = vst [vmem:[%s1416_s30 + $0x48] sm:$0xff] %v675_v0  ;;  %v680_v6 = vsel %vm616_vm8, %v532_v56, %v648_v62  ;;  %v535_v8 = vadd.f32 %v952_v4, %v1407_v24  ;;  %v599_v9 = vadd.f32 %v968_v5, %v1407_v24 }
 0x13d   : > { %723 = vst [vmem:[%s1416_s30 + $0xc8] sm:$0xff] %v691_v1  ;;  %v696_v7 = vsel %vm632_vm9, %v596_v57, %v664_v63  ;;  %712 = vst [vmem:[%s1416_s30 + $0x70] sm:$0xff] %v680_v6  ;;  %vm614_vm10 = vcmp.ge.f32.partialorder %v524_v2, 0.0  ;;  %v646_v10 = vmul.f32 0.2, %v524_v2  ;;  %vm630_vm11 = vcmp.ge.f32.partialorder %v588_v3, 0.0  ;;  %v526_v12 = vpop.f32.mrf.mxu0  ;;  %v590_v13 = vpop.f32.mrf.mxu1 }
 0x13e   : > { %728 = vst [vmem:[%s1416_s30 + $0xf0] sm:$0xff] %v696_v7  ;;  %v662_v11 = vmul.f32 0.2, %v588_v3  ;;  %vm617_vm12 = vcmp.ge.f32.partialorder %v535_v8, 0.0  ;;  %v649_v14 = vmul.f32 0.2, %v535_v8  ;;  %v527_v18 = vadd.f32 %v1407_v24, %v526_v12 }
 0x13f   : > { %vm633_vm13 = vcmp.ge.f32.partialorder %v599_v9, 0.0  ;;  %v665_v15 = vmul.f32 0.2, %v599_v9  ;;  %v678_v16 = vsel %vm614_vm10, %v524_v2, %v646_v10  ;;  %v591_v19 = vadd.f32 %v1407_v24, %v590_v13 }
 0x140   : > { %v694_v17 = vsel %vm630_vm11, %v588_v3, %v662_v11  ;;  %710 = vst [vmem:[%s1416_s30 + $0x60] sm:$0xff] %v678_v16  ;;  %v681_v20 = vsel %vm617_vm12, %v535_v8, %v649_v14  ;;  %vm615_vm14 = vcmp.ge.f32.partialorder %v527_v18, 0.0  ;;  %v647_v22 = vmul.f32 0.2, %v527_v18 }
 0x141   : > { %726 = vst [vmem:[%s1416_s30 + $0xe0] sm:$0xff] %v694_v17  ;;  %v697_v21 = vsel %vm633_vm13, %v599_v9, %v665_v15  ;;  %713 = vst [vmem:[%s1416_s30 + $0x78] sm:$0xff] %v681_v20  ;;  %vm631_vm15 = vcmp.ge.f32.partialorder %v591_v19, 0.0  ;;  %v663_v23 = vmul.f32 0.2, %v591_v19 }
 0x142   : > { %729 = vst [vmem:[%s1416_s30 + $0xf8] sm:$0xff] %v697_v21  ;;  %v679_v24 = vsel %vm615_vm14, %v527_v18, %v647_v22 }
 0x143   : > { %v695_v25 = vsel %vm631_vm15, %v591_v19, %v663_v23  ;;  %711 = vst [vmem:[%s1416_s30 + $0x68] sm:$0xff] %v679_v24 }
 0x144   : > { %727 = vst [vmem:[%s1416_s30 + $0xe8] sm:$0xff] %v695_v25 }
 0x145   : > { %1153 = shalt.err (!%p1150_p5)
}
 0x146   : > { %s1154_s4 = scalar_lea.hbm %s1479_s21, 4096  ;;  %s1158_s20 = scalar_lea.hbm %s1534_s3, 8192 }
 0x147   : > { %p1155_p7 = scmp.ne.s32.totalorder %s1479_s21, %s1154_s4  ;;  %p1159_p9 = scmp.lt.s32.totalorder %s1479_s21, %s1534_s3 }
 0x148   : > { %p1160_p11 = scmp.lt.s32.totalorder %s1158_s20, %s1154_s4 }
 0x149   : > { %p1156_p4 = pnand %p1155_p7, %p1343_p13 }
 0x14a   : > { %p1161_p10 = por %p1160_p11, %p1159_p9 }
 0x14b   : > { %p1157_p6 = pneg %p1156_p4 }
 0x14d   : > { %p1162_p1 = pnand %p1161_p10, %p1157_p6 }
 0x14f   : > { %1165 = shalt.err (!%p1162_p1)
}
 0x150   : > { %s1231_s30 = smov 128   ;;  %s1232_s29 = smov 8  }
 0x151   : > { %991 = dma.vmem_to_hbm [thread:$0]  (%p1343_p13), %s1481_s5, 4096, %s1479_s21, %s731_s10, %s1231_s30, %s1231_s30, %s1232_s29  }
 0x152 PF: > { %s760_s15 = sand.u32 1, %s1204_s12   ;;  %p1550_p8 = scmp.ne.s32.totalorder %s1541_s23, 0 }
 0x153   : > { %p1551_p12 = scmp.ge.s32.totalorder %s1224_s17, 2  ;;  %s761_s6 = scalar_lea.sflag [#allocation4], %s760_s15 }
 0x155   : > { %p1002_p0 = pnand %p1551_p12, %p1550_p8 }
 0x157   : > { %p1003_p2 = pneg %p1002_p0 }
 0x159   : > { %1199 = dma.done.wait (%p1003_p2), %s761_s6, 4096  }
 0x15a   : > { %1201 = vsyncadd (%p1003_p2), %s761_s6, 4294963200  ;;  %s20_s17 = sadd.s32 1, %s1224_s17   ;;  %s1552_s12 = smov %s1208_s13 }
 0x15b   : > { %p17_p3 = scmp.ge.s32.totalorder %s20_s17, 4   ;;  %s1553_s13 = smov %s1212_s14 }
 0x15c   : > { %s1554_s14 = smov %s1352_s19  ;;  %s1555_s15 = smov %s1220_s16 }
 0x15d   : > { %s1556_s16 = smov %s1558_s28  ;;  %19 = sbr.rel (!%p17_p3) target bundleno = 7 (0x7), region = 85 }
 0x162   :  { %766 = vsyncpa [#allocation3], 1 }
 0x163   :  { %768 = vsyncpa [#allocation3 + $0x1], 1 }
 0x164   :  { %769 = vsyncpa [#allocation6], 1 }
 0x165   :  { %770 = vsyncpa [#allocation4], 1 }
 0x166   :  { %772 = vsyncpa [#allocation4 + $0x1], 1 }

</bundles_post_ra>
